<compile_context>
chip_gen: v5e
topology: v5e:2x2
jax: 0.10.0
libtpu: 0.0.40
codegen_flags: <defaults>
</compile_context>

<pallas_src>
import functools
import math

import jax
import jax.numpy as jnp
from jax.experimental import pallas as pl
from jax.experimental.pallas import tpu as pltpu

_GN_EPS = 1e-5


# ----------------------------------------------------------------------------
# Tiling / budget helpers
# ----------------------------------------------------------------------------
def _pick_rows_tile(rows, cap=2048):
    """Largest divisor of `rows` that is a multiple of 8 (sublane rule) and <= cap.
    Falls back to `rows` (full extent is always a legal block)."""
    if rows <= cap:
        return rows
    for t in range(cap, 7, -1):
        if rows % t == 0 and t % 8 == 0:
            return t
    return rows


def _pick_lane_tile(n, cap=4096):
    """Largest divisor of `n` that is a multiple of 128 (lane rule) and <= cap, else n."""
    if n <= cap:
        return n
    for t in range(cap, 127, -1):
        if n % t == 0 and t % 128 == 0:
            return t
    return n


def _pick_d_tile(D, HW, cap_rows=2048):
    """Largest divisor tD of D with tD*HW <= cap_rows rows per slab (and a multiple-of-8
    row count); falls back to the full depth."""
    for t in range(D, 0, -1):
        if D % t == 0 and t * HW <= cap_rows and (t * HW) % 8 == 0:
            return t
    return D


def _compiler_params(semantics, est_bytes=0):
    """Per-kernel VMEM budget: only raise the scoped limit when the estimated working
    set needs it (never blanket-request 48 MiB; v7x has only 64 MiB physical VMEM)."""
    need = 2 * int(est_bytes) + 8 * 1024 * 1024
    if need > 32 * 1024 * 1024:
        return pltpu.CompilerParams(dimension_semantics=semantics,
                                    vmem_limit_bytes=int(min(need, 64 * 1024 * 1024)))
    return pltpu.CompilerParams(dimension_semantics=semantics)


# ----------------------------------------------------------------------------
# Pallas kernels
# ----------------------------------------------------------------------------
def _conv3x3_partial_kernel(xp_ref, w_ref, y_ref, st_ref, *, tD, H, W):
    """Pass A (conv deblock): 3x3x3 conv via 27 tap-accumulated bf16 MXU dots into an
    f32 accumulator (no materialized im2col slab), plus per-tile column sum / sum-sq
    computed as ones-vector MXU matmuls (GroupNorm partial stats)."""
    Cin = xp_ref.shape[-1]
    Cout = w_ref.shape[-1]
    tV = tD * H * W
    d0 = pl.multiple_of(pl.program_id(1) * tD, tD)
    acc = jnp.zeros((tV, Cout), jnp.float32)
    t = 0
    for dz in range(3):
        for dy in range(3):
            for dx in range(3):
                xt = xp_ref[pl.ds(d0 + dz, tD), dy:dy + H, dx:dx + W, :]   # bf16 tap
                acc = acc + jnp.dot(xt.reshape(tV, Cin), w_ref[t],
                                    preferred_element_type=jnp.float32)
                t += 1
    y_ref[...] = acc.astype(jnp.bfloat16)                                   # bf16 out
    ones = jnp.ones((1, tV), jnp.float32)                                   # MXU stats
    st_ref[0:1, :] = jnp.dot(ones, acc, preferred_element_type=jnp.float32)
    st_ref[1:2, :] = jnp.dot(ones, acc * acc, preferred_element_type=jnp.float32)


def _deconv_partial_kernel(x_ref, w_ref, y_ref, st_ref):
    """Pass A (deconv deblock): ConvTranspose3d(k==s) as one (tV,Cin)x(Cin,s^3*Cout)
    bf16 MXU matmul in the blocked layout + GN partial stats (ones-vector matmuls)."""
    y = jnp.dot(x_ref[...], w_ref[...], preferred_element_type=jnp.float32)
    y_ref[...] = y.astype(jnp.bfloat16)
    ones = jnp.ones((1, y.shape[0]), jnp.float32)
    st_ref[0:1, :] = jnp.dot(ones, y, preferred_element_type=jnp.float32)
    st_ref[1:2, :] = jnp.dot(ones, y * y, preferred_element_type=jnp.float32)


def _gn_apply_kernel(*refs, has_occ):
    """Pass B: per-column GN affine (scale/shift precomputed in tiny XLA glue) + ReLU,
    optionally fusing the 1x1x1 occ head on the normalized tile still resident in VMEM."""
    if has_occ:
        y_ref, sc_ref, sh_ref, wocc_ref, o_ref, occ_ref = refs
    else:
        y_ref, sc_ref, sh_ref, o_ref = refs
        wocc_ref = occ_ref = None
    y = y_ref[...].astype(jnp.float32)                     # (tV, K)
    out = jnp.maximum(y * sc_ref[...] + sh_ref[...], 0.0)  # f32 epilogue math
    o_ref[...] = out.astype(jnp.bfloat16)                  # bf16 activation out
    if has_occ:
        occ_ref[...] = jnp.dot(out.astype(jnp.bfloat16), wocc_ref[...],
                               preferred_element_type=jnp.float32)


def _confidence_kernel(x_ref, w_ref, o_ref):
    """Conv3d(1x1x1, Cout=1, bias=False)+Sigmoid as a (1,C)@(C,tV) matmul: lane-dense
    (1, tV) output, no cross-lane reduce, no 1/128-lane masked stores."""
    o_ref[...] = jax.nn.sigmoid(
        jnp.dot(w_ref[...], x_ref[...], preferred_element_type=jnp.float32))


def _matmul_kernel(x_ref, w_ref, o_ref):
    o_ref[...] = jnp.dot(x_ref[...], w_ref[...], preferred_element_type=jnp.float32)


# ----------------------------------------------------------------------------
# GroupNorm glue (tiny XLA between pass A and pass B)
# ----------------------------------------------------------------------------
def _gn_scale_shift(stats, gamma, beta, num_groups, reps, spatial, eps=_GN_EPS):
    """Fold per-tile column sums into per-column GN scale/shift.
    stats: (N, nt, 2, K) f32, columns ordered (reps, Cout) with Cout minor."""
    K = stats.shape[-1]
    cout = gamma.shape[0]
    gs = cout // num_groups
    s = jnp.sum(stats, axis=1)                      # (N, 2, K)
    col_sum, col_sq = s[:, 0], s[:, 1]              # (N, K)
    gid = (jnp.arange(K) % cout) // gs              # (K,) group id per column
    onehot = (gid[:, None] == jnp.arange(num_groups)[None, :]).astype(jnp.float32)
    count = float(spatial * (K // num_groups))      # elements per group per sample
    mean_g = (col_sum @ onehot) / count             # (N, G)
    ex2_g = (col_sq @ onehot) / count
    # NOTE: single-pass E[x^2]-E[x]^2 in f32 (known small drift vs. torch GroupNorm).
    rstd_g = jax.lax.rsqrt(ex2_g - mean_g * mean_g + eps)
    mean_c = jnp.take(mean_g, gid, axis=1)          # back to per-column (N, K)
    rstd_c = jnp.take(rstd_g, gid, axis=1)
    scale = rstd_c * jnp.tile(gamma, reps)[None, :]
    shift = jnp.tile(beta, reps)[None, :] - mean_c * scale
    return scale[:, None, :], shift[:, None, :]     # (N, 1, K) f32 each


# ----------------------------------------------------------------------------
# Kernel wrappers
# ----------------------------------------------------------------------------
def gn_relu_apply(y, scale, shift, occ_w=None):
    """Pass B wrapper: y (N, V, K) bf16, scale/shift (N, 1, K) f32, optional occ head."""
    N, V, K = y.shape
    tV = _pick_rows_tile(V)
    nv = V // tV
    has_occ = occ_w is not None
    in_specs = [pl.BlockSpec((None, tV, K), lambda n, v: (n, v, 0)),
                pl.BlockSpec((None, 1, K), lambda n, v: (n, 0, 0)),
                pl.BlockSpec((None, 1, K), lambda n, v: (n, 0, 0))]
    args = [y, scale, shift]
    out_shape = [jax.ShapeDtypeStruct((N, V, K), jnp.bfloat16)]
    out_specs = [pl.BlockSpec((None, tV, K), lambda n, v: (n, v, 0))]
    if has_occ:
        nc = occ_w.shape[-1]
        in_specs.append(pl.BlockSpec((K, nc), lambda n, v: (0, 0)))
        args.append(occ_w)
        out_shape.append(jax.ShapeDtypeStruct((N, V, nc), jnp.float32))
        out_specs.append(pl.BlockSpec((None, tV, nc), lambda n, v: (n, v, 0)))

    est = tV * K * 8 + (tV * occ_w.shape[-1] * 4 if has_occ else 0)
    res = pl.pallas_call(
        functools.partial(_gn_apply_kernel, has_occ=has_occ),
        grid=(N, nv),
        in_specs=in_specs,
        out_shape=tuple(out_shape) if has_occ else out_shape[0],
        out_specs=tuple(out_specs) if has_occ else out_specs[0],
        compiler_params=_compiler_params(("parallel", "parallel"), est),
    )(*args)
    if has_occ:
        return res[0], res[1]
    return res, None


def conv3x3_gn_relu(x, w, gamma, beta, num_groups, occ_w=None):
    """Conv3d(3x3x3, s=1, p=1, bias=False) + GroupNorm + ReLU (+ fused 1x1x1 occ head).
    x: (N,D,H,W,Cin) bf16 channels-last; w: (27, Cin, Cout) bf16 (tap-major).
    PyTorch checkpoint layout (Cout,Cin,kz,ky,kx) -> permute (kz,ky,kx,Cin,Cout) -> (27,Cin,Cout)."""
    N, D, H, W, Cin = x.shape
    Cout = w.shape[-1]
    V = D * H * W
    xp = jnp.pad(x, ((0, 0), (1, 1), (1, 1), (1, 1), (0, 0)))   # bf16 halo pad
    tD = _pick_d_tile(D, H * W)
    nd = D // tD
    tV = tD * H * W

    est = (xp.size // N) * 2 + w.size * 2 + 6 * tV * max(Cin, Cout) * 4
    y, stats = pl.pallas_call(
        functools.partial(_conv3x3_partial_kernel, tD=tD, H=H, W=W),
        grid=(N, nd),
        in_specs=[
            # padded activation: constant over d (fetched once per sample, stays resident)
            pl.BlockSpec((None, D + 2, H + 2, W + 2, Cin), lambda n, d: (n, 0, 0, 0, 0)),
            pl.BlockSpec((27, Cin, Cout), lambda n, d: (0, 0, 0)),
        ],
        out_shape=(jax.ShapeDtypeStruct((N, V, Cout), jnp.bfloat16),
                   jax.ShapeDtypeStruct((N, nd, 2, Cout), jnp.float32)),
        out_specs=(pl.BlockSpec((None, tV, Cout), lambda n, d: (n, d, 0)),
                   pl.BlockSpec((None, None, 2, Cout), lambda n, d: (n, d, 0, 0))),
        compiler_params=_compiler_params(("parallel", "parallel"), est),
    )(xp, w)

    scale, shift = _gn_scale_shift(stats, gamma, beta, num_groups, reps=1, spatial=V)
    out, occ = gn_relu_apply(y, scale, shift, occ_w)
    out = out.reshape(N, D, H, W, Cout)
    if occ is not None:
        occ = occ.reshape(N, D, H, W, occ_w.shape[-1])
    return out, occ


def deconv_gn_relu(x, w, gamma, beta, num_groups, s, cout):
    """ConvTranspose3d(kernel==stride==s, bias=False) + GroupNorm + ReLU.
    x: (N,D,H,W,Cin) bf16; w: (Cin, s^3*cout) bf16 (offset-major, channel minor).
    GN stats are invariant to the spatial interleave, so normalization happens in the
    blocked layout; only the interleave remains as XLA glue (on bf16)."""
    N, D, H, W, Cin = x.shape
    K = w.shape[-1]
    V = D * H * W
    x2 = x.reshape(N, V, Cin)                       # free reshape, already bf16
    tV = _pick_rows_tile(V)
    nv = V // tV

    est = tV * (Cin + K) * 4 + Cin * K * 2 + tV * K * 4
    y, stats = pl.pallas_call(
        _deconv_partial_kernel,
        grid=(N, nv),
        in_specs=[pl.BlockSpec((None, tV, Cin), lambda n, v: (n, v, 0)),
                  pl.BlockSpec((Cin, K), lambda n, v: (0, 0))],
        out_shape=(jax.ShapeDtypeStruct((N, V, K), jnp.bfloat16),
                   jax.ShapeDtypeStruct((N, nv, 2, K), jnp.float32)),
        out_specs=(pl.BlockSpec((None, tV, K), lambda n, v: (n, v, 0)),
                   pl.BlockSpec((None, None, 2, K), lambda n, v: (n, v, 0, 0))),
        compiler_params=_compiler_params(("parallel", "parallel"), est),
    )(x2, w)

    scale, shift = _gn_scale_shift(stats, gamma, beta, num_groups, reps=s ** 3, spatial=V)
    out, _ = gn_relu_apply(y, scale, shift)
    # TODO(synk): fold this interleave into pass-B's output DMA pattern (strided writes).
    out = out.reshape(N, D, H, W, s, s, s, cout)
    out = jnp.transpose(out, (0, 1, 4, 2, 5, 3, 6, 7))
    return out.reshape(N, D * s, H * s, W * s, cout)


def confidence_head(volumes, w_conf):
    """All-car confidence heads in one pallas_call, consuming the natural
    (car, bs, C, Z, H, W) layout (no XLA transposes). Returns list of (bs,1,Z,H,W)."""
    car_num = len(volumes)
    bs, C, Z, H, W = volumes[0].shape
    V = Z * H * W
    x = jnp.stack(volumes, axis=0).reshape(car_num * bs, C, V)
    tV = _pick_lane_tile(V)
    nv = V // tV
    out = pl.pallas_call(
        _confidence_kernel,
        grid=(car_num * bs, nv),
        in_specs=[pl.BlockSpec((None, C, tV), lambda b, v: (b, 0, v)),
                  pl.BlockSpec((1, C), lambda b, v: (0, 0))],
        out_shape=jax.ShapeDtypeStruct((car_num * bs, 1, V), jnp.float32),
        out_specs=pl.BlockSpec((None, 1, tV), lambda b, v: (b, 0, v)),
        compiler_params=_compiler_params(("parallel", "parallel")),
    )(x, w_conf)
    conf = out.reshape(car_num, bs, 1, Z, H, W)
    return [conf[c] for c in range(car_num)]


def pointwise_conv(x, w):
    """Standalone 1x1x1 Conv3d (bf16 matmul) — fallback occ head if an out_index lands
    on a deconv block (unused in the default config)."""
    lead = x.shape[:-1]
    cin = x.shape[-1]
    cout = w.shape[-1]
    rows = 1
    for d in lead:
        rows *= int(d)
    x2 = x.reshape(rows, cin).astype(jnp.bfloat16)
    tile = _pick_rows_tile(rows, cap=1024)
    out = pl.pallas_call(
        _matmul_kernel,
        grid=(rows // tile,),
        in_specs=[pl.BlockSpec((tile, cin), lambda i: (i, 0)),
                  pl.BlockSpec((cin, cout), lambda i: (0, 0))],
        out_shape=jax.ShapeDtypeStruct((rows, cout), jnp.float32),
        out_specs=pl.BlockSpec((tile, cout), lambda i: (i, 0)),
        compiler_params=_compiler_params(("parallel",)),
    )(x2, w)
    return out.reshape(*lead, cout)


# ----------------------------------------------------------------------------
# Geometric helpers (plain JAX glue, mirrors the PyTorch helper functions)
# ----------------------------------------------------------------------------
def get_discretized_transformation_matrix_3d(matrix, discrete_ratio, downsample_rate):
    m = matrix[:, :, :3, :4]
    m = m.at[:, :, :, -1].set(m[:, :, :, -1] / (discrete_ratio * downsample_rate))
    return m.astype(jnp.float32)


def eye_like(n, B):
    return jnp.tile(jnp.eye(n, dtype=jnp.float32)[None], (B, 1, 1))


def get_rotation_matrix3d(M, dsize):
    H, W, Z = dsize
    B = M.shape[0]
    center = jnp.array([W / 2, H / 2, Z / 12 * 5], dtype=jnp.float32)
    shift_m = eye_like(4, B).at[:, :3, 3].set(center)
    shift_m_inv = eye_like(4, B).at[:, :3, 3].set(-center)
    rotat_m = eye_like(4, B).at[:, :3, :3].set(M[:, :3, :3])
    affine_m = shift_m @ rotat_m @ shift_m_inv
    return affine_m[:, :3, :]


def get_transformation_matrix_3d(M, dsize):
    T = get_rotation_matrix3d(M, dsize)
    T = T.at[..., 3].add(M[..., 3])
    return T


def warp_affine3d(src, M, dsize):
    """kornia.geometry.transform.warp_affine3d (bilinear, zeros, align_corners=True).
    TODO(synk): gather-dominated; move to a Pallas DMA-gather kernel for large volumes."""
    Zo, Ho, Wo = dsize
    _, C, Zs, Hs, Ws = src.shape
    M44 = jnp.concatenate([M, jnp.array([[0.0, 0.0, 0.0, 1.0]], dtype=M.dtype)], axis=0)
    Minv = jnp.linalg.inv(M44)
    zz, yy, xx = jnp.meshgrid(
        jnp.arange(Zo, dtype=jnp.float32),
        jnp.arange(Ho, dtype=jnp.float32),
        jnp.arange(Wo, dtype=jnp.float32),
        indexing="ij",
    )
    ones = jnp.ones_like(xx)
    pts = jnp.stack([xx, yy, zz, ones], axis=-1)          # (Zo,Ho,Wo,4), (x,y,z,1)
    sp = pts @ Minv[:3].T                                  # (Zo,Ho,Wo,3) src pixel coords
    sx, sy, sz = sp[..., 0], sp[..., 1], sp[..., 2]
    x0, y0, z0 = jnp.floor(sx), jnp.floor(sy), jnp.floor(sz)
    srcv = src[0].astype(jnp.float32)                      # (C, Zs, Hs, Ws)
    out = jnp.zeros((C, Zo, Ho, Wo), jnp.float32)
    for dz in (0, 1):
        for dy in (0, 1):
            for dx in (0, 1):
                xi, yi, zi = x0 + dx, y0 + dy, z0 + dz
                w = (1.0 - jnp.abs(sx - xi)) * (1.0 - jnp.abs(sy - yi)) * (1.0 - jnp.abs(sz - zi))
                valid = ((xi >= 0) & (xi <= Ws - 1) & (yi >= 0) & (yi <= Hs - 1)
                         & (zi >= 0) & (zi <= Zs - 1)).astype(jnp.float32)
                xi_c = jnp.clip(xi, 0, Ws - 1).astype(jnp.int32)
                yi_c = jnp.clip(yi, 0, Hs - 1).astype(jnp.int32)
                zi_c = jnp.clip(zi, 0, Zs - 1).astype(jnp.int32)
                vals = srcv[:, zi_c, yi_c, xi_c]           # (C, Zo, Ho, Wo)
                out = out + vals * (w * valid)[None]
    return out[None]


# ----------------------------------------------------------------------------
# Head
# ----------------------------------------------------------------------------
class V2VOccHeadPallas:
    def __init__(self, key, num_classes=24, volume_h=(8,), volume_w=(8,), volume_z=(8,),
                 upsample_strides=(1, 2, 1, 2), out_indices=(0, 2),
                 conv_input=(48, 48, 24, 24), conv_output=(48, 24, 24, 24),
                 embed_dims=(48,), num_groups=24):
        self.num_classes = num_classes
        self.volume_h, self.volume_w, self.volume_z = volume_h, volume_w, volume_z
        self.out_indices = list(out_indices)
        self.num_groups = num_groups
        keys = iter(jax.random.split(key, 4 * len(conv_input) + len(self.out_indices) + 4))

        C0 = embed_dims[0]
        # Confidence head Conv3d(k=1, bias=False)+Sigmoid. NOTE: the original hardcodes
        # in_channels=192 (its real embed dim); here it equals embed_dims[0].
        # PyTorch checkpoint weight layout (1, Cin, 1, 1, 1) -> stored here as (1, Cin).
        self.w_conf = 0.05 * jax.random.normal(next(keys), (1, C0), jnp.float32)

        self.deblocks = []
        for cin, cout, stride in zip(conv_input, conv_output, upsample_strides):
            gamma = 1.0 + 0.1 * jax.random.normal(next(keys), (cout,), jnp.float32)
            beta = 0.1 * jax.random.normal(next(keys), (cout,), jnp.float32)
            if stride > 1:
                # ConvTranspose3d(k=s=stride, bias=False). Checkpoint layout
                # (Cin, Cout, k, k, k) -> (Cin, k, k, k, Cout) flattened to (Cin, k^3*Cout).
                K = stride ** 3 * cout
                w = (0.05 * jax.random.normal(next(keys), (cin, K), jnp.float32)
                     ).astype(jnp.bfloat16)
                self.deblocks.append(dict(kind="deconv", stride=stride, cout=cout,
                                          w=w, gamma=gamma, beta=beta))
            else:
                # Conv3d(k=3, s=1, p=1, bias=False). Checkpoint layout (Cout,Cin,kz,ky,kx)
                # -> (kz,ky,kx,Cin,Cout) reshaped to (27, Cin, Cout).
                w = (0.05 * jax.random.normal(next(keys), (27, cin, cout), jnp.float32)
                     ).astype(jnp.bfloat16)
                self.deblocks.append(dict(kind="conv", stride=1, cout=cout,
                                          w=w, gamma=gamma, beta=beta))

        # occ heads (1x1x1 conv, bias=False), keyed by producing deblock index so they
        # fuse into that deblock's pass-B kernel. PyTorch layout (nc, Cin, 1,1,1) -> (Cin, nc).
        self.occ_w = {
            i: (0.05 * jax.random.normal(next(keys), (conv_output[i], num_classes), jnp.float32)
                ).astype(jnp.bfloat16)
            for i in self.out_indices
        }

    def forward(self, mcar_volume_embed, img_metas):
        # TODO(synk): per-car image->volume transformer is external; volume embeddings
        #             are taken as inputs here.
        car_num = len(mcar_volume_embed)
        volume_embed = [v.astype(jnp.float32) for v in mcar_volume_embed]    # (bs, C, Z, H, W)
        confidences = confidence_head(volume_embed, self.w_conf)             # Pallas, all cars

        bs, C, Z, H, W = volume_embed[0].shape
        voxel_size = 0.1 * 48 / Z

        S = jnp.diag(jnp.array([1.0, 1.0, -1.0], dtype=jnp.float32))
        batch_tm = []
        for meta in img_metas:
            tms = []
            for car in range(car_num):
                matrix = jnp.asarray(meta["trans2ego"][car], dtype=jnp.float32)
                R = S @ matrix[:3, :3] @ S
                t = S @ matrix[:3, 3]
                matrix = matrix.at[:3, :3].set(R).at[:3, 3].set(t)
                tms.append(matrix)
            batch_tm.append(jnp.stack(tms))
        btm = jnp.stack(batch_tm)                                    # (bs, car_num, 4, 4)
        btm = get_discretized_transformation_matrix_3d(btm, voxel_size, 1)
        btm = btm.reshape(bs * car_num, 3, 4)
        btm = get_transformation_matrix_3d(btm, (W, H, Z)).reshape(bs, car_num, 3, 4)

        batch_fuse = []
        for b in range(bs):
            ego_feature = volume_embed[0][b][None]                   # (1, C, Z, H, W)
            ego_conf_b = confidences[0][b][None]                     # (1, 1, Z, H, W)
            fuse_features = []
            for neighbor in range(1, car_num):
                nf = volume_embed[neighbor][b][None]
                if img_metas[0]["vehicle_id"][0] == img_metas[0]["vehicle_id"][neighbor]:
                    nf = nf * 0.0
                else:
                    M = btm[b, neighbor, :3, :]
                    nf = warp_affine3d(nf, M, (Z, H, W))
                    cn = warp_affine3d(confidences[neighbor][b][None], M, (Z, H, W))
                    mask = (cn > ego_conf_b).astype(jnp.float32)
                    nf = nf * mask
                fuse_features.append(nf)
            if len(fuse_features) > 0:
                # TODO(synk): v2v_fuse transformer is external; deterministic sum fusion.
                fused = ego_feature + sum(fuse_features)             # (1, C, Z, H, W)
            else:
                fused = ego_feature
            batch_fuse.append(fused)

        fused = jnp.concatenate(batch_fuse, axis=0)                  # (bs, C, Z, H, W)
        # torch: cat -> permute(0,4,3,2,1) gives NCDHW (bs,C,W,H,Z); here we go straight
        # to the channels-last view of that (bs, W, H, Z, C) and bf16 for the kernels.
        x = jnp.transpose(fused, (0, 4, 3, 2, 1)).astype(jnp.bfloat16)

        occ_by_index = {}
        for i, blk in enumerate(self.deblocks):
            if blk["kind"] == "conv":
                occ_w = self.occ_w.get(i)
                x, occ = conv3x3_gn_relu(x, blk["w"], blk["gamma"], blk["beta"],
                                         self.num_groups, occ_w=occ_w)
                if occ is not None:
                    occ_by_index[i] = occ                            # occ head fused in pass B
            else:
                x = deconv_gn_relu(x, blk["w"], blk["gamma"], blk["beta"],
                                   self.num_groups, blk["stride"], blk["cout"])
                if i in self.out_indices:                            # fallback (unused here)
                    occ_by_index[i] = pointwise_conv(x, self.occ_w[i])

        occ_preds = [jnp.transpose(occ_by_index[i], (0, 4, 1, 2, 3)) for i in self.out_indices]
        ego_confidence = jnp.transpose(confidences[0], (0, 1, 4, 3, 2))
        return {"volume_embed": volume_embed, "occ_preds": occ_preds, "confidences": ego_confidence}


# ----------------------------------------------------------------------------
# Main
# ----------------------------------------------------------------------------
if __name__ == "__main__":
    key = jax.random.PRNGKey(0)
    k_params, k_f0, k_f1 = jax.random.split(key, 3)

    bs, C, Z, H, W = 1, 48, 8, 8, 8
    head = V2VOccHeadPallas(
        k_params,
        num_classes=24,
        volume_h=(H,), volume_w=(W,), volume_z=(Z,),
        upsample_strides=(1, 2, 1, 2), out_indices=(0, 2),
        conv_input=(48, 48, 24, 24), conv_output=(48, 24, 24, 24),
        embed_dims=(C,),
    )

    # Two cars (ego + one neighbor), per-car volume embeddings (bs, C, Z, H, W)
    mcar_feats = [
        jax.random.normal(k_f0, (bs, C, Z, H, W), jnp.float32),
        jax.random.normal(k_f1, (bs, C, Z, H, W), jnp.float32),
    ]

    c, s = math.cos(0.3), math.sin(0.3)
    ego_t2e = [[1.0, 0.0, 0.0, 0.0],
               [0.0, 1.0, 0.0, 0.0],
               [0.0, 0.0, 1.0, 0.0],
               [0.0, 0.0, 0.0, 1.0]]
    nbr_t2e = [[c, -s, 0.0, 1.2],
               [s, c, 0.0, -0.6],
               [0.0, 0.0, 1.0, 0.2],
               [0.0, 0.0, 0.0, 1.0]]
    img_metas = [{"trans2ego": [ego_t2e, nbr_t2e], "vehicle_id": [0, 1]}]

    outs = head.forward(mcar_feats, img_metas)
    jax.block_until_ready(outs)

    # light sanity checks on shapes
    assert outs["occ_preds"][0].shape == (1, 24, 8, 8, 8)
    assert outs["occ_preds"][1].shape == (1, 24, 16, 16, 16)
    assert outs["confidences"].shape == (1, 1, W, H, Z)
    print("KERNEL_OK")
</pallas_src>

<mosaic_0001>
module attributes {stable_mosaic.version = 11 : i64} {
  func.func @_confidence_kernel(%arg0: i32, %arg1: i32, %arg2: memref<1x48x512xf32, #tpu.memory_space<vmem>>, %arg3: memref<1x48xf32, #tpu.memory_space<vmem>>, %arg4: memref<1x1x512xf32, #tpu.memory_space<vmem>>) attributes {dimension_semantics = [#tpu.dimension_semantics<parallel>, #tpu.dimension_semantics<parallel>], iteration_bounds = array<i64: 2, 1>, scalar_prefetch = 0 : i64, scratch_operands = 0 : i64, tpu.core_type = #tpu.core_type<tc>, window_params = [{transform_indices = @transform_0, window_bounds = array<i64: 1, 48, 512>}, {pipeline_mode = #tpu.pipeline_mode<synchronous>, transform_indices = @transform_1, window_bounds = array<i64: 1, 48>}, {transform_indices = @transform_2, window_bounds = array<i64: 1, 1, 512>}]} {
    %c0 = arith.constant 0 : index
    %c0_0 = arith.constant 0 : index
    %0 = vector.load %arg3[%c0, %c0_0] : memref<1x48xf32, #tpu.memory_space<vmem>>, vector<1x48xf32>
    %c0_1 = arith.constant 0 : index
    %c0_2 = arith.constant 0 : index
    %c0_3 = arith.constant 0 : index
    %1 = vector.load %arg2[%c0_1, %c0_2, %c0_3] : memref<1x48x512xf32, #tpu.memory_space<vmem>>, vector<1x48x512xf32>
    %2 = vector.shape_cast %1 : vector<1x48x512xf32> to vector<48x512xf32>
    %cst = arith.constant dense<0.000000e+00> : vector<1x512xf32>
    %3 = tpu.matmul %0, %2, %cst {dimension_numbers = #tpu.dot_dimension_numbers<[1], [0], [0], [1], [0, 0, 1, 1], [], []>} : vector<1x48xf32>, vector<48x512xf32>, vector<1x512xf32> -> vector<1x512xf32>
    %4 = arith.negf %3 : vector<1x512xf32>
    %5 = math.exp %4 : vector<1x512xf32>
    %cst_4 = arith.constant 1.000000e+00 : f32
    %6 = vector.broadcast %cst_4 : f32 to vector<1x512xf32>
    %7 = arith.addf %6, %5 : vector<1x512xf32>
    %8 = arith.divf %6, %7 : vector<1x512xf32>
    %c0_5 = arith.constant 0 : index
    %c0_6 = arith.constant 0 : index
    %c0_7 = arith.constant 0 : index
    %9 = vector.load %arg4[%c0_5, %c0_6, %c0_7] : memref<1x1x512xf32, #tpu.memory_space<vmem>>, vector<1x1x512xf32>
    %10 = vector.shape_cast %9 : vector<1x1x512xf32> to vector<1x512xf32>
    %11 = vector.shape_cast %8 : vector<1x512xf32> to vector<1x1x512xf32>
    tpu.vector_store %arg4[%c0_5, %c0_6, %c0_7], %11 {strides = array<i32>} : memref<1x1x512xf32, #tpu.memory_space<vmem>>, vector<1x1x512xf32>,
    return
  }
  func.func @transform_0(%arg0: i32, %arg1: i32) -> (i32, i32, i32) {
    %c0_i32 = arith.constant 0 : i32
    %c0_i32_0 = arith.constant 0 : i32
    return %arg0, %c0_i32, %arg1 : i32, i32, i32
  }
  func.func @transform_1(%arg0: i32, %arg1: i32) -> (i32, i32) {
    %c0_i32 = arith.constant 0 : i32
    %c0_i32_0 = arith.constant 0 : i32
    %c0_i32_1 = arith.constant 0 : i32
    return %c0_i32, %c0_i32_0 : i32, i32
  }
  func.func @transform_2(%arg0: i32, %arg1: i32) -> (i32, i32, i32) {
    %c0_i32 = arith.constant 0 : i32
    %c0_i32_0 = arith.constant 0 : i32
    return %arg0, %c0_i32, %arg1 : i32, i32, i32
  }
}

</mosaic_0001>

<bundles_post_ra>
// kernel: tpu_custom_call.1
= control target key start
LH: loop header
LB: loop body
LE: loop exit
PB: predicated region body
PF: predicated region fallthrough
CT: control target
= control target key end

     0   :  { %7 = vsyncpa [#allocation3], 0  ;;  %s1009_s0 = inlined_call_operand.hbm [shape: f32[2,48,512], index: 0, kind: input, shape index: {}]   ;;  %s1010_s1 = inlined_call_operand.hbm [shape: f32[1,48], index: 1, kind: input, shape index: {}]   ;;  %s1011_s2 = inlined_call_operand.hbm [shape: f32[2,1,512], index: 2, kind: output, shape index: {}]  }
   0x1   :  { %9 = vsyncpa [#allocation3 + $0x1], 0 }
   0x2   :  { %10 = vsyncpa [#allocation6], 0 }
   0x3   :  { %11 = vsyncpa [#allocation4], 0 }
   0x4   :  { %13 = vsyncpa [#allocation4 + $0x1], 0  ;;  %s795_s9 = smov 0   ;;  %s797_s10 = smov 0  }
   0x5   :  { %s799_s11 = smov 0   ;;  %s801_s12 = smov 0  }
   0x6   :  { %s803_s13 = smov 0   ;;  %s805_s14 = smov 0  }
   0x7 LB: > { %s514_s15 = sadd.s32 4294967295, %s775_s14   ;;  %s515_s16 = sadd.s32 4294967294, %s775_s14   ;;  %s775_s14 = sphi %s805_s14, %s19_s14   ;;  %s771_s13 = sphi %s803_s13, %s1029_s13   ;;  %s767_s12 = sphi %s801_s12, %s1028_s12   ;;  %s763_s11 = sphi %s799_s11, %s1027_s11   ;;  %s759_s10 = sphi %s797_s10, %s1026_s10   ;;  %s755_s9 = sphi %s795_s9, %s1025_s9  }
   0x8   : > { %s40_s17 = sadd.s32 1, %s763_s11  ;;  %p47_p0 = scmp.ne.s32.totalorder %s763_s11, %s759_s10 }
   0x9   : > { %p48_p1 = scmp.eq.s32.totalorder %s775_s14, 0  ;;  %p53_p2 = scmp.ne.s32.totalorder %s759_s10, %s755_s9 }
   0xa   : > { %p833_p3 = scmp.eq.s32.totalorder %s514_s15, 0  ;;  %p100_p4 = scmp.eq.s32.totalorder %s514_s15, 1 }
   0xb   : > { %p837_p5 = por %p48_p1, %p47_p0  ;;  %p106_p6 = scmp.eq.s32.totalorder %s515_s16, 1 }
   0xc   : > { %p843_p7 = por %p833_p3, %p53_p2  ;;  %p847_p8 = por %p100_p4, %p47_p0 }
   0xd   : > { %p851_p9 = por %p106_p6, %p53_p2  ;;  %p516_p10 = scmp.ge.s32.totalorder %s775_s14, 1 }
   0xe   : > { %p113_p11 = scmp.lt.s32.totalorder %s775_s14, 3  ;;  %s125_s25 = sshll.u32 %s1010_s1, 4  ;;  %s126_s25 = int_to_ptr.hbm [resolvable:$true] %s125_s25 }
   0xf   : > { %s777_s27 = smov [#allocation5]   ;;  %p518_p13 = scmp.ge.s32.totalorder %s775_s14, 2 }
  0x10   : > { %p860_p12 = pnand %p516_p10, %p113_p11  ;;  %s127_s28 = sshll.u32 %s777_s27, 4  ;;  %s128_s28 = int_to_ptr.vmem [resolvable:$true] %s127_s28 }
  0x11   : > { %p559_p1 = scmp.lt.s32.totalorder %s775_s14, 2  ;;  %s31_s30 = sadd.s32 1, %s771_s13 }
  0x12   : > { %p546_p0 = pneg %p860_p12  ;;  %p33_p6 = scmp.ge.s32.totalorder %s31_s30, 2 }
  0x13   : > { %p872_p4 = pnand %p559_p1, %p837_p5  ;;  %s138_s3 = sand.u32 1, %s763_s11  }
  0x14   : > { %p547_p2 = pnand %p546_p0, %p833_p3  ;;  %s1031_s30 = smov (%p33_p6, %s31_s30), 0 }
  0x15   : > { %s535_s4 = smul.u32 192, %s138_s3  ;;  %s35_s5 = ssub.s32 %s771_s13, %s1031_s30 }
  0x16   : > { %549 = dma.hbm_to_vmem [thread:$0]  (!%p547_p2), %s126_s25, 16, %s128_s28, [#allocation6]  }
  0x17   : > { %s536_s6 = smul.u32 192, %s771_s13  ;;  %p38_p10 = scmp.eq.s32.totalorder %s35_s5, 0 }
  0x18   : > { %s142_s16 = scalar_lea.vmem [#allocation2], %s535_s4  ;;  %s139_s25 = scalar_lea.sflag [#allocation3], %s138_s3 }
  0x19   : > { %s149_s15 = scalar_lea.hbm %s1009_s0, %s536_s6  ;;  %s152_s19 = sshll.u32 %s142_s16, 4  ;;  %s153_s19 = int_to_ptr.vmem [resolvable:$true] %s152_s19 }
  0x1a   : > { %s889_s23 = scalar_select %p38_p10, %s763_s11, %s40_s17  }
  0x1b   : > { %s150_s24 = sshll.u32 %s149_s15, 4  ;;  %s778_s27 = smov 512   ;;  %s151_s24 = int_to_ptr.hbm [resolvable:$true] %s150_s24 }
  0x1c   : > { %s779_s28 = smov 32   ;;  %164 = sbr.rel (%p860_p12) target bundleno = 219 (0xdb), region = 28 }
  0x1d   : > { %553 = dma.hbm_to_vmem [thread:$0]  (!%p872_p4), %s151_s24, 3072, %s153_s19, %s139_s25, %s778_s27, %s778_s27, %s779_s28  }
  0x1e   : > { %s896_s5 = sand.u32 (!%p860_p12), 1, %s759_s10  }
  0x1f   : > { %s537_s4 = smul.u32 (!%p860_p12), 192, %s896_s5  ;;  %s167_s17 = scalar_lea.sflag (!%p860_p12), [#allocation3], %s896_s5 }
  0x21   : > { %s900_s6 = scalar_lea.vmem [#allocation2], %s537_s4 }
  0x22   : > { %742 = dma.done.wait (%p843_p7), %s167_s17, 3072  }
  0x23   : > { %744 = vsyncadd (%p843_p7), %s167_s17, 4294964224 }
  0x24   : > { %746 = dma.done.wait (%p833_p3), [#allocation6], 16  }
  0x25   : > { %748 = vsyncadd (%p833_p3), [#allocation6], 4294967280  ;;  %v220_v0 = vld [vmem:[%s900_s6 + $0xa0] sm:$0xff]  ;;  %v221_v1 = vld [vmem:[%s900_s6 + $0xa8] sm:$0xff]  ;;  %vm224_vm0 = vcmask 392192   ;;  %s522_s18 = sshll.u32 %s896_s5, 2 }
  0x26   : > { %v222_v2 = vld [vmem:[%s900_s6 + $0xb0] sm:$0xff]  ;;  %238 = vmatpush.msra.mxu0 %v220_v0  ;;  %258 = vmatpush.msra.mxu1 %v221_v1  ;;  %v223_v3 = vld [vmem:[%s900_s6 + $0xb8] sm:$0xff]  ;;  %v216_v4 = vld [vmem:[%s900_s6 + $0x80] sm:$0xff]  ;;  %s532_s20 = sshll.u32 %s767_s12, 2  ;;  %s196_s3 = scalar_lea.vmem [#allocation7], %s522_s18 }
  0x27   : > { %v217_v5 = vld [vmem:[%s900_s6 + $0x88] sm:$0xff]  ;;  %278 = vmatpush.msra.mxu2 %v222_v2  ;;  %298 = vmatpush.msra.mxu3 %v223_v3  ;;  %v218_v6 = vld [vmem:[%s900_s6 + $0x90] sm:$0xff]  ;;  %v219_v7 = vld [vmem:[%s900_s6 + $0x98] sm:$0xff]  ;;  %s416_s29 = scalar_lea.hbm %s1011_s2, %s532_s20  ;;  %s418_s7 = sshll.u32 %s196_s3, 4  ;;  %s419_s7 = int_to_ptr.vmem [resolvable:$true] %s418_s7 }
  0x28   : > { %v212_v8 = vld [vmem:[%s900_s6 + $0x60] sm:$0xff]  ;;  %239 = vmatpush.msra.mxu0 %v216_v4  ;;  %259 = vmatpush.msra.mxu1 %v217_v5  ;;  %v213_v9 = vld [vmem:[%s900_s6 + $0x68] sm:$0xff]  ;;  %v214_v10 = vld [vmem:[%s900_s6 + $0x70] sm:$0xff]  ;;  %s420_s8 = sshll.u32 %s416_s29, 4  ;;  %s404_s15 = scalar_lea.sflag [#allocation4], %s896_s5  ;;  %s421_s8 = int_to_ptr.hbm [resolvable:$true] %s420_s8 }
  0x29   : > { %v215_v11 = vld [vmem:[%s900_s6 + $0x78] sm:$0xff]  ;;  %279 = vmatpush.msra.mxu2 %v218_v6  ;;  %299 = vmatpush.msra.mxu3 %v219_v7  ;;  %v208_v12 = vld [vmem:[%s900_s6 + $0x40] sm:$0xff]  ;;  %v209_v13 = vld [vmem:[%s900_s6 + $0x48] sm:$0xff]  ;;  %s703_s16 = sshra.s32 %s421_s8, 4  ;;  %s709_s27 = scalar_lea.hbm %s1011_s2, 8  ;;  %s704_s16 = int_to_ptr.hbm [resolvable:$true] %s703_s16 }
  0x2a   : > { %240 = vmatpush.msra.mxu0 %v212_v8  ;;  %260 = vmatpush.msra.mxu1 %v213_v9  ;;  %v210_v14 = vld [vmem:[%s900_s6 + $0x50] sm:$0xff]  ;;  %v211_v15 = vld [vmem:[%s900_s6 + $0x58] sm:$0xff]  ;;  %v204_v16 = vld [vmem:[%s900_s6 + $0x20] sm:$0xff]  ;;  %s705_s19 = scalar_lea.hbm %s704_s16, 4  ;;  %p710_p11 = scmp.lt.s32.totalorder %s704_s16, %s1011_s2 }
  0x2b   : > { %280 = vmatpush.msra.mxu2 %v214_v10  ;;  %300 = vmatpush.msra.mxu3 %v215_v11  ;;  %v205_v17 = vld [vmem:[%s900_s6 + $0x28] sm:$0xff]  ;;  %v206_v18 = vld [vmem:[%s900_s6 + $0x30] sm:$0xff]  ;;  %v207_v19 = vld [vmem:[%s900_s6 + $0x38] sm:$0xff]  ;;  %p706_p3 = scmp.ne.s32.totalorder %s704_s16, %s705_s19  ;;  %p711_p12 = scmp.lt.s32.totalorder %s709_s27, %s705_s19 }
  0x2c   : > { %241 = vmatpush.msra.mxu0 %v208_v12  ;;  %261 = vmatpush.msra.mxu1 %v209_v13  ;;  %v200_v20 = vld [vmem:[%s900_s6] sm:$0xff]  ;;  %v201_v21 = vld [vmem:[%s900_s6 + $0x8] sm:$0xff]  ;;  %v202_v22 = vld [vmem:[%s900_s6 + $0x10] sm:$0xff] }
  0x2d   : > { %281 = vmatpush.msra.mxu2 %v210_v14  ;;  %301 = vmatpush.msra.mxu3 %v211_v15  ;;  %v203_v23 = vld [vmem:[%s900_s6 + $0x18] sm:$0xff]  ;;  %v199_v24 = vld [vmem:[#allocation5] sm:$0x1]  ;;  %v398_v15 = vlaneseq  ;;  %p707_p5 = pnand %p706_p3, %p847_p8  ;;  %p712_p0 = por %p711_p12, %p710_p11 }
  0x2e   : > { %242 = vmatpush.msra.mxu0 %v204_v16  ;;  %262 = vmatpush.msra.mxu1 %v205_v17 }
  0x2f   : > { %282 = vmatpush.msra.mxu2 %v206_v18  ;;  %302 = vmatpush.msra.mxu3 %v207_v19  ;;  %p708_p7 = pneg %p707_p5 }
  0x30   : > { %243 = vmatpush.msra.mxu0 %v200_v20  ;;  %263 = vmatpush.msra.mxu1 %v201_v21 }
  0x31   : > { %283 = vmatpush.msra.mxu2 %v202_v22  ;;  %303 = vmatpush.msra.mxu3 %v203_v23  ;;  %p713_p1 = pnand %p712_p0, %p708_p7 }
  0x32   : > { %523 = vmatmul.msk.f32.vlgmr.msra.gmra.mxu0 %vm224_vm0, %v199_v24  ;;  %524 = vmatmul.msk.f32.vlgmr.msra.gmra.mxu1 %vm224_vm0, %v199_v24 }
  0x33   : > { %525 = vmatmul.msk.f32.vlgmr.msra.gmra.mxu2 %vm224_vm0, %v199_v24  ;;  %526 = vmatmul.msk.f32.vlgmr.msra.gmra.mxu3 %vm224_vm0, %v199_v24  ;;  %vm391_vm0 = vcmask 1040384  }
  0xaf   : > { %v245_v25 = vpop.f32.mrf.mxu0  ;;  %v265_v26 = vpop.f32.mrf.mxu1 }
  0xb0   : > { %v527_v27 = vmul.f32 -1.442695, %v245_v25  ;;  %v528_v28 = vmul.f32 -1.442695, %v265_v26 }
  0xb2   : > { %613 = vpow2.f32 %v527_v27 }
  0xb3   : > { %615 = vpow2.f32 %v528_v28 }
  0xb6   : > { %v285_v29 = vpop.f32.mrf.mxu2  ;;  %v305_v30 = vpop.f32.mrf.mxu3 }
  0xb7   : > { %v529_v31 = vmul.f32 -1.442695, %v285_v29  ;;  %v530_v32 = vmul.f32 -1.442695, %v305_v30 }
  0xb8   : > { %v614_v33 = vpop.eup %613 }
  0xb9   : > { %v616_v34 = vpop.eup %615  ;;  %v934_v35 = vadd.f32 1.0, %v614_v33  ;;  %617 = vpow2.f32 %v529_v31 }
  0xba   : > { %v321_v36 = vadd.f32 1.0, %v616_v34  ;;  %619 = vpow2.f32 %v530_v32 }
  0xbb   : > { %621 = vrcp.f32 %v934_v35  ;;  %vm329_vm3 = vweird.f32 %v934_v35  ;;  %v333_v6 = vand.u32 2147483647, %v934_v35  ;;  %v335_v7 = vand.u32 2147483648, %v934_v35 }
  0xbc   : > { %623 = vrcp.f32 %v321_v36  ;;  %v348_v49 = vand.u32 2147483647, %v321_v36  ;;  %v350_v50 = vand.u32 2147483648, %v321_v36  ;;  %vm344_vm1 = vweird.f32 %v321_v36 }
  0xbd   : > { %v336_v20 = vor.u32 1.1754944e-38, %v335_v7 }
  0xbe   : > { %vm947_vm5 = vcmp.eq.f32.partialorder %v348_v49, 8.507059e+37  ;;  %v351_v59 = vor.u32 1.1754944e-38, %v350_v50 }
  0xbf   : > { %v618_v37 = vpop.eup %617 }
  0xc0   : > { %v620_v38 = vpop.eup %619  ;;  %v322_v39 = vadd.f32 1.0, %v618_v37 }
  0xc1   : > { %v937_v40 = vpop.eup %621  ;;  %v323_v41 = vadd.f32 1.0, %v620_v38 }
  0xc2   : > { %v624_v42 = vpop.eup %623  ;;  %625 = vrcp.f32 %v322_v39  ;;  %v325_v43 = vmul.f32 %v937_v40, %v934_v35  ;;  %v363_v60 = vand.u32 2147483647, %v322_v39  ;;  %v365_v61 = vand.u32 2147483648, %v322_v39 }
  0xc3   : > { %v340_v44 = vmul.f32 %v624_v42, %v321_v36  ;;  %627 = vrcp.f32 %v323_v41  ;;  %vm345_vm2 = vweird.f32 %v624_v42  ;;  %vm330_vm7 = vweird.f32 %v937_v40 }
  0xc4   : > { %v326_v46 = vsub.f32 1.0, %v325_v43  ;;  %vm943_vm4 = vmor %vm344_vm1, %vm345_vm2  ;;  %vm359_vm8 = vweird.f32 %v322_v39  ;;  %v378_v1 = vand.u32 2147483647, %v323_v41  ;;  %v380_v2 = vand.u32 2147483648, %v323_v41 }
  0xc5   : > { %v341_v45 = vsub.f32 1.0, %v340_v44  ;;  %v366_v8 = vor.u32 1.1754944e-38, %v365_v61  ;;  %vm965_vm11 = vmor %vm329_vm3, %vm330_vm7  ;;  %vm364_vm12 = vcmp.eq.f32.partialorder %v363_v60, 8.507059e+37  ;;  %vm374_vm13 = vweird.f32 %v323_v41 }
  0xc6   : > { %v327_v54 = vmul.f32 %v937_v40, %v326_v46  ;;  %vm379_vm15 = vcmp.eq.f32.partialorder %v378_v1, 8.507059e+37  ;;  %v381_v13 = vor.u32 1.1754944e-38, %v380_v2  ;;  %vm393_vm1 = vcmask 1042434  }
  0xc7   : > { %v342_v47 = vmul.f32 %v624_v42, %v341_v45  ;;  %vm334_vm2 = vcmp.eq.f32.partialorder %v333_v6, 8.507059e+37  ;;  %vm395_vm3 = vcmask 1041408  }
  0xc8   : > { %v626_v48 = vpop.eup %625  ;;  %v328_v3 = vadd.f32 %v937_v40, %v327_v54 }
  0xc9   : > { %v343_v51 = vadd.f32 %v624_v42, %v342_v47  ;;  %v355_v52 = vmul.f32 %v626_v48, %v322_v39  ;;  %v628_v53 = vpop.eup %627  ;;  %vm360_vm6 = vweird.f32 %v626_v48 }
  0xca   : > { %v370_v56 = vmul.f32 %v628_v53, %v323_v41  ;;  %vm375_vm9 = vweird.f32 %v628_v53  ;;  %vm361_vm10 = vmor %vm359_vm8, %vm360_vm6  ;;  %v332_v17 = vsel %vm965_vm11, %v937_v40, %v328_v3 }
  0xcb   : > { %v356_v55 = vsub.f32 1.0, %v355_v52  ;;  %v347_v62 = vsel %vm943_vm4, %v624_v42, %v343_v51  ;;  %vm376_vm14 = vmor %vm374_vm13, %vm375_vm9  ;;  %v337_v23 = vsel %vm334_vm2, %v336_v20, %v332_v17  ;;  %vm400_vm4 = vcmp.lt.s32.totalorder %v398_v15, 512 }
  0xcc   : > { %v371_v0 = vsub.f32 1.0, %v370_v56  ;;  %v352_v9 = vsel %vm947_vm5, %v351_v59, %v347_v62 }
  0xcd   : > { %v357_v63 = vmul.f32 %v626_v48, %v356_v55  ;;  %v388_v18 = vrot.slane %v352_v9, 7 }
  0xce   : > { %v372_v5 = vmul.f32 %v628_v53, %v371_v0 }
  0xcf   : > { %v358_v4 = vadd.f32 %v626_v48, %v357_v63  ;;  %v392_v24 = vsel %vm391_vm0, %v337_v23, %v388_v18 }
  0xd0   : > { %v373_v12 = vadd.f32 %v628_v53, %v372_v5 }
  0xd1   : > { %v362_v11 = vsel %vm361_vm10, %v626_v48, %v358_v4 }
  0xd2   : > { %v367_v14 = vsel %vm364_vm12, %v366_v8, %v362_v11  ;;  %v377_v16 = vsel %vm376_vm14, %v628_v53, %v373_v12 }
  0xd3   : > { %v389_v19 = vrot.slane %v367_v14, 6  ;;  %v382_v21 = vsel %vm379_vm15, %v381_v13, %v377_v16 }
  0xd4   : > { %v390_v22 = vrot.slane %v382_v21, 5 }
  0xd6   : > { %v394_v25 = vsel %vm393_vm1, %v389_v19, %v390_v22 }
  0xd7   : > { %v396_v26 = vsel %vm395_vm3, %v392_v24, %v394_v25 }
  0xd8   : > { %402 = vst.msk [vmem:[%s196_s3] sm:$0xf] %vm400_vm4, %v396_v26 }
  0xd9   : > { %716 = shalt.err (!%p713_p1)
}
  0xda   : > { %544 = dma.vmem_to_hbm [thread:$0]  (%p847_p8), %s419_s7, 64, %s421_s8, %s404_s15  }
  0xdb PF: > { %s432_s5 = sand.u32 1, %s755_s9   ;;  %p555_p2 = pnand %p518_p13, %p851_p9 }
  0xdc   : > { %s433_s17 = scalar_lea.sflag [#allocation4], %s432_s5 }
  0xdd   : > { %p556_p4 = pneg %p555_p2 }
  0xdf   : > { %750 = dma.done.wait (%p556_p4), %s433_s17, 64  }
  0xe0   : > { %752 = vsyncadd (%p556_p4), %s433_s17, 4294967232  ;;  %s19_s14 = sadd.s32 1, %s775_s14   ;;  %s1025_s9 = smov %s759_s10 }
  0xe1   : > { %p16_p6 = scmp.ge.s32.totalorder %s19_s14, 4   ;;  %s1026_s10 = smov %s763_s11 }
  0xe2   : > { %s1027_s11 = smov %s889_s23  ;;  %s1028_s12 = smov %s771_s13 }
  0xe3   : > { %s1029_s13 = smov %s1031_s30  ;;  %18 = sbr.rel (!%p16_p6) target bundleno = 7 (0x7), region = 77 }
  0xe8   :  { %439 = vsyncpa [#allocation3], 1 }
  0xe9   :  { %441 = vsyncpa [#allocation3 + $0x1], 1 }
  0xea   :  { %442 = vsyncpa [#allocation6], 1 }
  0xeb   :  { %443 = vsyncpa [#allocation4], 1 }
  0xec   :  { %445 = vsyncpa [#allocation4 + $0x1], 1 }

</bundles_post_ra>
